<compile_context>
chip_gen: v7x
topology: tpu7x:2x2x1
jax: 0.10.0
libtpu: 0.0.40
codegen_flags: <defaults>
</compile_context>

<pallas_src>
import functools

import numpy as np
import jax
import jax.numpy as jnp
from jax import lax
from jax.experimental import pallas as pl
from jax.experimental.pallas import tpu as pltpu

# ----------------------------- model config ---------------------------------
MAX_DEPTH = 3
INPUT_DIM = 32
OUTPUT_DIM = 8
N_INTERNAL = 2 ** MAX_DEPTH - 1        # 7 internal nodes
N_LEAVES = 2 ** MAX_DEPTH              # 8 leaves


def _round_up(n: int, m: int) -> int:
    return ((n + m - 1) // m) * m


# --------------------- compile-time tree selector tables --------------------
def _build_selectors(max_depth: int, n_internal_pad: int):
    """0/±1 selector matrices turning the decision rows into per-level routing
    factors for every depth-(max_depth-1) node ("pair" of sibling leaves).

    Returns (G, C, pairs, pairs_pad, n_fac):
      fac = G @ decisions + C has n_fac+1 blocks of `pairs_pad` rows each:
        blocks 0..n_fac-1 : level factors (d[anc] or 1 - d[anc]) along the path
        block  n_fac      : the decision at the depth-(D-1) node itself (dl)
    """
    D = max_depth
    pairs = 2 ** (D - 1)                 # depth-(D-1) nodes
    P = _round_up(pairs, 8)              # 8-sublane aligned
    n_fac = max(1, D - 1)
    n_blocks = n_fac + 1
    G = np.zeros((n_blocks * P, n_internal_pad), np.float32)
    C = np.zeros((n_blocks * P, 1), np.float32)
    if D == 1:
        C[:pairs, 0] = 1.0               # single "ones" factor block
    else:
        for k in range(D - 1):
            for i in range(pairs):
                anc = (2 ** k - 1) + (i >> (D - 1 - k))
                goes_right = (i >> (D - 2 - k)) & 1
                r = k * P + i
                if goes_right:           # factor = 1 - d[anc]
                    G[r, anc] = -1.0
                    C[r, 0] = 1.0
                else:                    # factor = d[anc]
                    G[r, anc] = 1.0
    base = 2 ** (D - 1) - 1
    for i in range(pairs):               # last-level decision d[base + i]
        G[n_fac * P + i, base + i] = 1.0
    return G, C, pairs, P, n_fac


# --------------------------------- kernel ------------------------------------
def _tree_kernel(x_ref, thr_ref, g_ref, c_ref, a_ref, b_ref, out_ref, *,
                 n_fac: int, pairs_pad: int):
    """x:(TB,F)  thr:(Npad,F)  g:((n_fac+1)*P,Npad)  c:(...,1)  a,b:(O,P)  out:(O,TB)."""
    thr = thr_ref[...]
    x = x_ref[...]
    if x.dtype != thr.dtype:             # bf16 callers hit the MXU directly; others cast post-DMA
        x = x.astype(thr.dtype)

    # decisions[n, b] = sigmoid(thr[n] . x[b]); batch on the lane axis (MXU).
    logits = lax.dot_general(thr, x, (((1,), (1,)), ((), ())),
                             preferred_element_type=jnp.float32)           # (Npad, TB)
    dec = jax.nn.sigmoid(logits)

    # Per-level routing factors via one tiny 0/±1 selector matmul + lane-broadcast bias.
    fac = lax.dot_general(g_ref[...], dec, (((1,), (0,)), ((), ())),
                          preferred_element_type=jnp.float32) + c_ref[...]  # (nblk*P, TB)

    P = pairs_pad
    h = fac[0:P, :]                                   # depth-(D-1) path probabilities
    for k in range(1, n_fac):
        h = h * fac[k * P:(k + 1) * P, :]
    dl = fac[n_fac * P:(n_fac + 1) * P, :]            # last-level decisions

    # preds = sum_pairs h * (dl*leaf_left + (1-dl)*leaf_right) = A@h + B@(h*dl)
    preds = (lax.dot_general(a_ref[...], h, (((1,), (0,)), ((), ())),
                             preferred_element_type=jnp.float32) +
             lax.dot_general(b_ref[...], h * dl, (((1,), (0,)), ((), ())),
                             preferred_element_type=jnp.float32))           # (O, TB)

    # Softmax over the class axis (axis 0).  The leaf table was shifted by its
    # global max in the wrapper, so preds <= 0 always (convex combination of
    # non-positive values): no per-column XLU max reduce, and exp() never
    # overflows -- even for garbage columns of a partial last tile (masked on
    # writeback; they may contain NaN, which is expected and discarded).
    e = jnp.exp(preds)
    denom = jnp.sum(e, axis=0, keepdims=True)         # (1, TB)
    inv = pl.reciprocal(denom, approx=True)           # EUP seed
    inv = inv * (2.0 - denom * inv)                   # one Newton step -> ~f32 accuracy
    out_ref[...] = (e * inv).astype(out_ref.dtype)


# -------------------------------- wrapper -------------------------------------
def decision_tree_forward(x, feature_thresholds, leaf_predictions, *,
                          max_depth: int | None = None,
                          block_batch: int = 32768,
                          lane_major_output: bool = False,
                          out_dtype=jnp.float32):
    """Equivalent of DecisionTreeModel.forward.

    Returns softmax predictions of shape (B, O) by default (PyTorch layout; costs
    one extra XLA transpose over the small output).  Pass lane_major_output=True
    to get the kernel's lane-dense (O, B) slab with no extra HBM pass, and/or
    out_dtype=jnp.bfloat16 to halve the output write.
    """
    n_internal, input_dim = feature_thresholds.shape
    n_leaves, output_dim = leaf_predictions.shape
    if max_depth is None:
        max_depth = n_leaves.bit_length() - 1
    assert n_leaves == 2 ** max_depth and n_internal == n_leaves - 1

    x2d = jnp.reshape(x, (-1, input_dim))             # x.view(-1, input_dim)
    batch = x2d.shape[0]

    # MXU input dtype: feed bf16 straight through (halves the dominant HBM read);
    # anything else computes in f32 (x is cast in-kernel, post-DMA).
    compute_dtype = jnp.bfloat16 if x2d.dtype == jnp.bfloat16 else jnp.float32

    # Thresholds: pad internal-node rows to a multiple of 8 (clean sublane tiles).
    n_pad = _round_up(n_internal, 8)
    thr = jnp.zeros((n_pad, input_dim), compute_dtype)
    thr = thr.at[:n_internal].set(feature_thresholds.astype(compute_dtype))

    # Leaf recombination tables (A, B) from the globally max-shifted leaf table.
    # Shift is an exact softmax invariance; assumes leaf-value spread << 80 so
    # exp() does not fully underflow (true for any sane parameterization).
    leaf = leaf_predictions.astype(jnp.float32)
    leaf = leaf - jnp.max(leaf)
    G_np, C_np, pairs, P, n_fac = _build_selectors(max_depth, n_pad)
    a_tab = jnp.zeros((output_dim, P), jnp.float32).at[:, :pairs].set(leaf[1::2].T)
    b_tab = jnp.zeros((output_dim, P), jnp.float32).at[:, :pairs].set(
        (leaf[0::2] - leaf[1::2]).T)
    g = jnp.asarray(G_np)
    c = jnp.asarray(C_np)
    n_blocks = n_fac + 1

    # Batch tile: big enough to amortize the ~0.35 us per-grid-step overhead, but
    # keep the grid at >= 2 steps for mid-sized batches so the ("parallel",) axis
    # actually feeds both v7x TensorCores and double-buffering overlaps.
    block_batch = max(128, _round_up(block_batch, 128))
    tb = min(block_batch, _round_up(batch, 128))
    if batch > 2 * 128:
        tb = min(tb, _round_up(pl.cdiv(batch, 2), 128))
    grid = (pl.cdiv(batch, tb),)

    # VMEM budget from *padded* tile sizes: the (tb, 32) x tile is lane-padded
    # 32 -> 128 in VMEM (4x logical bytes); x and out are double-buffered.
    # Default (tb=32768, f32 in/out): 2*(16 MiB + 1 MiB) + 12 MiB ~= 46 MiB --
    # inside v7x's 64 MiB physical VMEM, trivially inside v5e/v6e's 128 MiB.
    x_tile_bytes = tb * 128 * jnp.dtype(compute_dtype).itemsize
    o_tile_bytes = tb * _round_up(output_dim, 8) * jnp.dtype(out_dtype).itemsize
    vmem_limit = int(min(max(2 * (x_tile_bytes + o_tile_bytes) + (12 << 20),
                             32 << 20), 112 << 20))

    kernel = functools.partial(_tree_kernel, n_fac=n_fac, pairs_pad=P)
    out_t = pl.pallas_call(
        kernel,
        out_shape=jax.ShapeDtypeStruct((output_dim, batch), out_dtype),
        grid=grid,
        in_specs=[
            pl.BlockSpec((tb, input_dim), lambda i: (i, 0)),            # batch-tiled x
            pl.BlockSpec((n_pad, input_dim), lambda i: (0, 0)),         # VMEM-resident params
            pl.BlockSpec((n_blocks * P, n_pad), lambda i: (0, 0)),
            pl.BlockSpec((n_blocks * P, 1), lambda i: (0, 0)),
            pl.BlockSpec((output_dim, P), lambda i: (0, 0)),
            pl.BlockSpec((output_dim, P), lambda i: (0, 0)),
        ],
        out_specs=pl.BlockSpec((output_dim, tb), lambda i: (0, i)),     # lane-dense output slab
        compiler_params=pltpu.CompilerParams(
            dimension_semantics=("parallel",),     # megacore sharding of the batch on v7x
            vmem_limit_bytes=vmem_limit,
        ),
    )(x2d, thr, g, c, a_tab, b_tab)

    if lane_major_output:
        return out_t              # (O, B): no extra HBM pass over the output
    # PyTorch layout (B, O): one extra XLA transpose of the (small) output slab.
    return out_t.T


# ----------------------------- reference (pure JAX) --------------------------
def _reference_forward(x, thr, leaf, max_depth=MAX_DEPTH):
    x2d = jnp.reshape(x, (-1, thr.shape[1])).astype(jnp.float32)
    dec = jax.nn.sigmoid(x2d @ thr.T.astype(jnp.float32))
    n_internal = 2 ** max_depth - 1

    def trav(node_idx, depth):
        if depth >= max_depth or node_idx >= n_internal:
            return leaf[node_idx - n_internal].astype(jnp.float32)
        d = dec[:, node_idx:node_idx + 1]
        return d * trav(2 * node_idx + 1, depth + 1) + (1 - d) * trav(2 * node_idx + 2, depth + 1)

    return jax.nn.softmax(trav(0, 0), axis=1)


if __name__ == "__main__":
    key = jax.random.PRNGKey(0)
    kx, kt, kl, kx2 = jax.random.split(key, 4)

    # deterministic "randn" parameter init (mimics nn.Parameter(torch.randn(...)))
    feature_thresholds = jax.random.normal(kt, (N_INTERNAL, INPUT_DIM), dtype=jnp.float32)
    leaf_predictions = jax.random.normal(kl, (N_LEAVES, OUTPUT_DIM), dtype=jnp.float32)

    # Tolerance: observed error is dominated by f32 MXU accumulation order and the
    # approx-reciprocal + Newton step (~1e-6); headroom left for generations whose
    # default f32 matmul uses reduced-precision passes.
    ATOL = 2e-3

    # (1) module-shaped small input: (2, 4, 32) -> view(-1, 32) = (8, 32); default
    #     (B, O) f32 output matches the PyTorch forward exactly.
    x = jax.random.normal(kx, (2, 4, INPUT_DIM), dtype=jnp.float32)
    out = jax.block_until_ready(
        decision_tree_forward(x, feature_thresholds, leaf_predictions))
    ref = _reference_forward(x, feature_thresholds, leaf_predictions)
    assert out.shape == (8, OUTPUT_DIM)
    assert jnp.allclose(out, ref, atol=ATOL, rtol=ATOL), "mismatch vs reference (small)"
    assert jnp.allclose(jnp.sum(out, axis=1), jnp.ones(8), atol=1e-3)

    # (2) multi-step grid + partial last tile (B=600 is not a multiple of 128),
    #     exercising the pipeline path and the lane-major fast output (no wrapper
    #     transpose).  block_batch is shrunk so this stays a small test.
    xb = jax.random.normal(kx2, (600, INPUT_DIM), dtype=jnp.float32)
    out2 = jax.block_until_ready(
        decision_tree_forward(xb, feature_thresholds, leaf_predictions,
                              block_batch=256, lane_major_output=True))
    ref2 = _reference_forward(xb, feature_thresholds, leaf_predictions)
    assert out2.shape == (OUTPUT_DIM, 600)
    assert jnp.allclose(out2.T, ref2, atol=ATOL, rtol=ATOL), "mismatch vs reference (tiled)"

    print("KERNEL_OK")
</pallas_src>

<mosaic_0001>
module attributes {stable_mosaic.version = 11 : i64} {
  func.func @_tree_kernel(%arg0: i32, %arg1: memref<128x32xf32, #tpu.memory_space<vmem>>, %arg2: memref<8x32xf32, #tpu.memory_space<vmem>>, %arg3: memref<24x8xf32, #tpu.memory_space<vmem>>, %arg4: memref<24x1xf32, #tpu.memory_space<vmem>>, %arg5: memref<8x8xf32, #tpu.memory_space<vmem>>, %arg6: memref<8x8xf32, #tpu.memory_space<vmem>>, %arg7: memref<8x128xf32, #tpu.memory_space<vmem>>) attributes {dimension_semantics = [#tpu.dimension_semantics<parallel>], iteration_bounds = array<i64: 1>, scalar_prefetch = 0 : i64, scratch_operands = 0 : i64, tpu.core_type = #tpu.core_type<tc>, window_params = [{transform_indices = @transform_0, window_bounds = array<i64: 128, 32>}, {pipeline_mode = #tpu.pipeline_mode<synchronous>, transform_indices = @transform_1, window_bounds = array<i64: 8, 32>}, {pipeline_mode = #tpu.pipeline_mode<synchronous>, transform_indices = @transform_2, window_bounds = array<i64: 24, 8>}, {pipeline_mode = #tpu.pipeline_mode<synchronous>, transform_indices = @transform_3, window_bounds = array<i64: 24, 1>}, {pipeline_mode = #tpu.pipeline_mode<synchronous>, transform_indices = @transform_4, window_bounds = array<i64: 8, 8>}, {pipeline_mode = #tpu.pipeline_mode<synchronous>, transform_indices = @transform_5, window_bounds = array<i64: 8, 8>}, {transform_indices = @transform_6, window_bounds = array<i64: 8, 128>}]} {
    %c0 = arith.constant 0 : index
    %c0_0 = arith.constant 0 : index
    %0 = vector.load %arg2[%c0, %c0_0] : memref<8x32xf32, #tpu.memory_space<vmem>>, vector<8x32xf32>
    %c0_1 = arith.constant 0 : index
    %c0_2 = arith.constant 0 : index
    %1 = vector.load %arg1[%c0_1, %c0_2] : memref<128x32xf32, #tpu.memory_space<vmem>>, vector<128x32xf32>
    %cst = arith.constant dense<0.000000e+00> : vector<8x128xf32>
    %2 = tpu.matmul %0, %1, %cst {dimension_numbers = #tpu.dot_dimension_numbers<[1], [1], [0], [0], [0, 0, 1, 0], [], []>} : vector<8x32xf32>, vector<128x32xf32>, vector<8x128xf32> -> vector<8x128xf32>
    %3 = arith.negf %2 : vector<8x128xf32>
    %4 = math.exp %3 : vector<8x128xf32>
    %cst_3 = arith.constant 1.000000e+00 : f32
    %5 = vector.broadcast %cst_3 : f32 to vector<8x128xf32>
    %6 = arith.addf %5, %4 : vector<8x128xf32>
    %7 = arith.divf %5, %6 : vector<8x128xf32>
    %c0_4 = arith.constant 0 : index
    %c0_5 = arith.constant 0 : index
    %8 = vector.load %arg3[%c0_4, %c0_5] : memref<24x8xf32, #tpu.memory_space<vmem>>, vector<24x8xf32>
    %cst_6 = arith.constant dense<0.000000e+00> : vector<24x128xf32>
    %9 = tpu.matmul %8, %7, %cst_6 {dimension_numbers = #tpu.dot_dimension_numbers<[1], [0], [0], [1], [0, 0, 1, 1], [], []>} : vector<24x8xf32>, vector<8x128xf32>, vector<24x128xf32> -> vector<24x128xf32>
    %c0_7 = arith.constant 0 : index
    %c0_8 = arith.constant 0 : index
    %10 = vector.load %arg4[%c0_7, %c0_8] : memref<24x1xf32, #tpu.memory_space<vmem>>, vector<24x1xf32>
    %11 = vector.broadcast %10 : vector<24x1xf32> to vector<24x128xf32>
    %12 = arith.addf %9, %11 : vector<24x128xf32>
    %13 = vector.extract_strided_slice %12 {offsets = [0, 0], sizes = [8, 128], strides = [1, 1]} : vector<24x128xf32> to vector<8x128xf32>
    %14 = vector.extract_strided_slice %12 {offsets = [8, 0], sizes = [8, 128], strides = [1, 1]} : vector<24x128xf32> to vector<8x128xf32>
    %15 = arith.mulf %13, %14 : vector<8x128xf32>
    %16 = vector.extract_strided_slice %12 {offsets = [16, 0], sizes = [8, 128], strides = [1, 1]} : vector<24x128xf32> to vector<8x128xf32>
    %c0_9 = arith.constant 0 : index
    %c0_10 = arith.constant 0 : index
    %17 = vector.load %arg5[%c0_9, %c0_10] : memref<8x8xf32, #tpu.memory_space<vmem>>, vector<8x8xf32>
    %cst_11 = arith.constant dense<0.000000e+00> : vector<8x128xf32>
    %18 = tpu.matmul %17, %15, %cst_11 {dimension_numbers = #tpu.dot_dimension_numbers<[1], [0], [0], [1], [0, 0, 1, 1], [], []>} : vector<8x8xf32>, vector<8x128xf32>, vector<8x128xf32> -> vector<8x128xf32>
    %c0_12 = arith.constant 0 : index
    %c0_13 = arith.constant 0 : index
    %19 = vector.load %arg6[%c0_12, %c0_13] : memref<8x8xf32, #tpu.memory_space<vmem>>, vector<8x8xf32>
    %20 = arith.mulf %15, %16 : vector<8x128xf32>
    %cst_14 = arith.constant dense<0.000000e+00> : vector<8x128xf32>
    %21 = tpu.matmul %19, %20, %cst_14 {dimension_numbers = #tpu.dot_dimension_numbers<[1], [0], [0], [1], [0, 0, 1, 1], [], []>} : vector<8x8xf32>, vector<8x128xf32>, vector<8x128xf32> -> vector<8x128xf32>
    %22 = arith.addf %18, %21 : vector<8x128xf32>
    %23 = math.exp %22 : vector<8x128xf32>
    %cst_15 = arith.constant dense<0.000000e+00> : vector<128xf32>
    %24 = vector.multi_reduction <add>, %23, %cst_15 [0] : vector<8x128xf32> to vector<128xf32>
    %25 = vector.shape_cast %24 : vector<128xf32> to vector<1x128xf32>
    %26 = tpu.reciprocal %25 {approx = true} : vector<1x128xf32> -> vector<1x128xf32>
    %27 = arith.mulf %25, %26 : vector<1x128xf32>
    %cst_16 = arith.constant 2.000000e+00 : f32
    %28 = vector.broadcast %cst_16 : f32 to vector<1x128xf32>
    %29 = arith.subf %28, %27 : vector<1x128xf32>
    %30 = arith.mulf %26, %29 : vector<1x128xf32>
    %31 = vector.broadcast %30 : vector<1x128xf32> to vector<8x128xf32>
    %32 = arith.mulf %23, %31 : vector<8x128xf32>
    %c0_17 = arith.constant 0 : index
    %c0_18 = arith.constant 0 : index
    %33 = vector.load %arg7[%c0_17, %c0_18] : memref<8x128xf32, #tpu.memory_space<vmem>>, vector<8x128xf32>
    tpu.vector_store %arg7[%c0_17, %c0_18], %32 {strides = array<i32>} : memref<8x128xf32, #tpu.memory_space<vmem>>, vector<8x128xf32>,
    return
  }
  func.func @transform_0(%arg0: i32) -> (i32, i32) {
    %c0_i32 = arith.constant 0 : i32
    %c0_i32_0 = arith.constant 0 : i32
    return %arg0, %c0_i32 : i32, i32
  }
  func.func @transform_1(%arg0: i32) -> (i32, i32) {
    %c0_i32 = arith.constant 0 : i32
    %c0_i32_0 = arith.constant 0 : i32
    %c0_i32_1 = arith.constant 0 : i32
    return %c0_i32, %c0_i32_0 : i32, i32
  }
  func.func @transform_2(%arg0: i32) -> (i32, i32) {
    %c0_i32 = arith.constant 0 : i32
    %c0_i32_0 = arith.constant 0 : i32
    %c0_i32_1 = arith.constant 0 : i32
    return %c0_i32, %c0_i32_0 : i32, i32
  }
  func.func @transform_3(%arg0: i32) -> (i32, i32) {
    %c0_i32 = arith.constant 0 : i32
    %c0_i32_0 = arith.constant 0 : i32
    %c0_i32_1 = arith.constant 0 : i32
    return %c0_i32, %c0_i32_0 : i32, i32
  }
  func.func @transform_4(%arg0: i32) -> (i32, i32) {
    %c0_i32 = arith.constant 0 : i32
    %c0_i32_0 = arith.constant 0 : i32
    %c0_i32_1 = arith.constant 0 : i32
    return %c0_i32, %c0_i32_0 : i32, i32
  }
  func.func @transform_5(%arg0: i32) -> (i32, i32) {
    %c0_i32 = arith.constant 0 : i32
    %c0_i32_0 = arith.constant 0 : i32
    %c0_i32_1 = arith.constant 0 : i32
    return %c0_i32, %c0_i32_0 : i32, i32
  }
  func.func @transform_6(%arg0: i32) -> (i32, i32) {
    %c0_i32 = arith.constant 0 : i32
    %c0_i32_0 = arith.constant 0 : i32
    return %c0_i32, %arg0 : i32, i32
  }
}

</mosaic_0001>

<bundles_post_ra>
// kernel: tpu_custom_call.1
= control target key start
LH: loop header
LB: loop body
LE: loop exit
PB: predicated region body
PF: predicated region fallthrough
CT: control target
= control target key end

     0   :  { %vm41_vm0 = vcmask 261120   ;;  %v635_v2 = vmov 0.0|0.0   ;;  %vm636_vm2 = vmmov 0   ;;  %v637_v5 = vmov 0.0   ;;  %s805_s0 = inlined_call_operand.vmem [shape: f32[8,32], index: 0, kind: input, shape index: {}]   ;;  %s806_s1 = inlined_call_operand.vmem [shape: f32[8,32], index: 1, kind: input, shape index: {}]   ;;  %s807_s2 = inlined_call_operand.vmem [shape: f32[24,8], index: 2, kind: input, shape index: {}]   ;;  %s808_s3 = inlined_call_operand.vmem [shape: f32[24,1], index: 3, kind: input, shape index: {}]   ;;  %s809_s4 = inlined_call_operand.vmem [shape: f32[8,8], index: 4, kind: input, shape index: {}]   ;;  %s810_s5 = inlined_call_operand.vmem [shape: f32[8,8], index: 5, kind: input, shape index: {}]   ;;  %s811_s6 = inlined_call_operand.hbm [shape: f32[8,8], index: 6, kind: output, shape index: {}]  }
   0x1   :  { %v25_v0 = vld [vmem:[%s805_s0] sm:$0xff]  ;;  %v26_v1 = vld [vmem:[%s805_s0 + $0x8] sm:$0xff]  ;;  %562 = vmatprep.subr.bf16.mxu0 %v635_v2  ;;  %vm683_vm1 = vmpackc.low %vm41_vm0, %vm41_vm0  ;;  %538 = vmatprep.mubr.msk.f32.mxu0 %vm636_vm2, %v637_v5 }
   0x2   :  { %v563_v3 = vpack.c.bf16 %v26_v1, %v25_v0  ;;  %541 = vmatprep.subr.mxu1 %v637_v5  ;;  %543 = vmatprep.mubr.msk.f32.mxu1 %vm636_vm2, %v637_v5  ;;  %v27_v6 = vld [vmem:[%s805_s0 + $0x10] sm:$0xff]  ;;  %v28_v7 = vld [vmem:[%s805_s0 + $0x18] sm:$0xff] }
   0x4   :  { %565 = vmatpush3.bf16.xpose.msk.msra.mxu0 %vm683_vm1, %v563_v3 }
   0x5   :  { %566 = vmatprep.subr.bf16.mxu0 %v635_v2 }
   0x6   :  { %11 = vsyncpa [#allocation3], 0  ;;  %v567_v8 = vpack.c.bf16 %v28_v7, %v27_v6  ;;  %v29_v9 = vld [vmem:[%s805_s0 + $0x20] sm:$0xff]  ;;  %v30_v10 = vld [vmem:[%s805_s0 + $0x28] sm:$0xff]  ;;  %v638_v30 = vmov 0   ;;  %vm190_vm3 = vcmask 64512  }
   0x7   :  { %v571_v11 = vpack.c.bf16 %v30_v10, %v29_v9  ;;  %v31_v12 = vld [vmem:[%s805_s0 + $0x30] sm:$0xff]  ;;  %v32_v13 = vld [vmem:[%s805_s0 + $0x38] sm:$0xff]  ;;  %v33_v15 = vld [vmem:[%s805_s0 + $0x40] sm:$0xff]  ;;  %601 = vset.pattern.permute.xlu0 %v638_v30  ;;  %602 = vset.pattern.permute.xlu1 %v638_v30 }
   0x8   :  { %v575_v14 = vpack.c.bf16 %v32_v13, %v31_v12  ;;  %v34_v16 = vld [vmem:[%s805_s0 + $0x48] sm:$0xff]  ;;  %v35_v18 = vld [vmem:[%s805_s0 + $0x50] sm:$0xff]  ;;  %v36_v19 = vld [vmem:[%s805_s0 + $0x58] sm:$0xff] }
   0x9   :  { %v579_v17 = vpack.c.bf16 %v34_v16, %v33_v15  ;;  %v583_v20 = vpack.c.bf16 %v36_v19, %v35_v18  ;;  %v37_v21 = vld [vmem:[%s805_s0 + $0x60] sm:$0xff]  ;;  %v38_v22 = vld [vmem:[%s805_s0 + $0x68] sm:$0xff]  ;;  %v39_v24 = vld [vmem:[%s805_s0 + $0x70] sm:$0xff] }
   0xa   :  { %v587_v23 = vpack.c.bf16 %v38_v22, %v37_v21  ;;  %v40_v25 = vld [vmem:[%s805_s0 + $0x78] sm:$0xff]  ;;  %v24_v27 = vld [vmem:[%s806_s1] sm:$0xff]  ;;  %v174_v29 = vld [vmem:[%s808_s3 + $0x10] sm:$0xff] }
   0xb   :  { %v591_v26 = vpack.c.bf16 %v40_v25, %v39_v24  ;;  %v172_v28 = vld [vmem:[%s808_s3] sm:$0xff]  ;;  %187 = vperm.xlu1 %602, %v174_v29   ;;  %v173_v31 = vld [vmem:[%s808_s3 + $0x8] sm:$0xff]  ;;  %v171_v40 = vld [vmem:[%s807_s2 + $0x10] sm:$0xff] }
   0xc   :  { %569 = vmatpush3.bf16.xpose.msk.msra.mxu0 %vm683_vm1, %v567_v8  ;;  %177 = vperm.xlu0 %601, %v172_v28   ;;  %v169_v37 = vld [vmem:[%s807_s2] sm:$0xff]  ;;  %v170_v39 = vld [vmem:[%s807_s2 + $0x8] sm:$0xff] }
   0xd   :  { %570 = vmatprep.subr.bf16.mxu0 %v635_v2  ;;  %v282_v55 = vld [vmem:[%s810_s5] sm:$0xff]  ;;  %s639_s5 = smov [#allocation2]  }
   0xe   :  { %v281_v56 = vld [vmem:[%s809_s4] sm:$0xff]  ;;  %s450_s19 = sshll.u32 %s639_s5, 4  ;;  %s451_s19 = int_to_ptr.vmem [resolvable:$true] %s450_s19 }
   0xf   :  { %s611_s4 = scalar_lea.vmem %s451_s19, 128  ;;  %p616_p1 = scmp.lt.s32.totalorder %s451_s19, %s451_s19 }
  0x10   :  { %182 = vperm.xlu0 %601, %v173_v31   ;;  %p612_p0 = scmp.ne.s32.totalorder %s451_s19, %s611_s4  ;;  %p617_p2 = scmp.lt.s32.totalorder %s611_s4, %s611_s4 }
  0x12   :  { %p618_p3 = por %p617_p2, %p616_p1 }
  0x14   :  { %573 = vmatpush3.bf16.xpose.msk.msra.mxu0 %vm683_vm1, %v571_v11  ;;  %p619_p4 = pnand %p618_p3, %p612_p0 }
  0x15   :  { %574 = vmatprep.subr.bf16.mxu0 %v635_v2 }
  0x1c   :  { %577 = vmatpush3.bf16.xpose.msk.msra.mxu0 %vm683_vm1, %v575_v14 }
  0x1d   :  { %578 = vmatprep.subr.bf16.mxu0 %v635_v2 }
  0x24   :  { %581 = vmatpush3.bf16.xpose.msk.msra.mxu0 %vm683_vm1, %v579_v17 }
  0x25   :  { %582 = vmatprep.subr.bf16.mxu0 %v635_v2 }
  0x2c   :  { %585 = vmatpush3.bf16.xpose.msk.msra.mxu0 %vm683_vm1, %v583_v20 }
  0x2d   :  { %586 = vmatprep.subr.bf16.mxu0 %v635_v2 }
  0x34   :  { %589 = vmatpush3.bf16.xpose.msk.msra.mxu0 %vm683_vm1, %v587_v23 }
  0x35   :  { %590 = vmatprep.subr.bf16.mxu0 %v635_v2 }
  0x3c   :  { %593 = vmatpush3.bf16.xpose.msk.msra.mxu0 %vm683_vm1, %v591_v26 }
  0x43   :  { %539 = vmatmul.mubr.msk.f32.vlgmr.msra.gmra.mrb[0].mxu0 %vm41_vm0, %v24_v27 }
  0x8a   :  { %v188_v49 = vpop.permute.xlu1 %187 }
  0x8b   :  { %v178_v41 = vpop.permute.xlu0 %177 }
  0x8f   :  { %v183_v44 = vpop.permute.xlu0 %182 }
 0x116   :  { %v159_v32 = vpop.f32.mrb[0].mxu0 }
 0x117   :  { %v475_v33 = vmul.f32 -1.442695, %v159_v32  ;;  %v540_v34 = vpop.f32.mrb[1].mxu0 }
 0x119   :  { %603 = vpow2.f32 %v475_v33 }
 0x123   :  { %v604_v35 = vpop.eup %603 }
 0x124   :  { %v166_v36 = vadd.f32 1.0, %v604_v35 }
 0x126   :  { %605 = vrcp.f32 %v166_v36 }
 0x130   :  { %v606_v38 = vpop.eup %605 }
 0x131   :  { %542 = vmatpush3.msra.mxu1 %v606_v38 }
 0x132   :  { %544 = vmatmul.mubr.msk.f32.vlgmr.msra.gmra.mrb[0].mxu1 %vm190_vm3, %v169_v37  ;;  %552 = vmatprep.subr.mxu1 %v637_v5 }
 0x133   :  { %546 = vmatprep.mubr.msk.f32.mxu1 %vm636_vm2, %v637_v5 }
 0x136   :  { %547 = vmatmul.mubr.msk.f32.gmra.mrb[2].mxu1 %vm190_vm3, %v170_v39 }
 0x137   :  { %549 = vmatprep.mubr.msk.f32.mxu1 %vm636_vm2, %v637_v5 }
 0x13a   :  { %550 = vmatmul.mubr.msk.f32.gmra.mrb[4].mxu1 %vm190_vm3, %v171_v40 }
 0x13b   :  { %554 = vmatprep.mubr.msk.f32.mxu1 %vm636_vm2, %v637_v5 }
 0x205   :  { %v266_v42 = vpop.f32.mrb[0].mxu1 }
 0x206   :  { %v545_v43 = vpop.f32.mrb[1].mxu1  ;;  %v267_v46 = vadd.f32 %v266_v42, %v178_v41 }
 0x209   :  { %v271_v45 = vpop.f32.mrb[2].mxu1 }
 0x20a   :  { %v272_v47 = vadd.f32 %v271_v45, %v183_v44  ;;  %v548_v48 = vpop.f32.mrb[3].mxu1 }
 0x20c   :  { %v280_v50 = vmul.f32 %v272_v47, %v267_v46 }
 0x20d   :  { %v276_v51 = vpop.f32.mrb[4].mxu1 }
 0x20e   :  { %v277_v52 = vadd.f32 %v276_v51, %v188_v49  ;;  %v551_v53 = vpop.f32.mrb[5].mxu1 }
 0x210   :  { %v283_v54 = vmul.f32 %v280_v50, %v277_v52 }
 0x212   :  { %553 = vmatpush3.msra.mxu1 %v283_v54 }
 0x213   :  { %555 = vmatmul.mubr.msk.f32.vlgmr.msra.gmra.mrb[6].mxu1 %vm190_vm3, %v282_v55  ;;  %557 = vmatprep.subr.mxu1 %v637_v5 }
 0x214   :  { %558 = vmatpush3.msra.mxu1 %v280_v50  ;;  %559 = vmatprep.mubr.msk.f32.mxu1 %vm636_vm2, %v637_v5 }
 0x21b   :  { %560 = vmatmul.mubr.msk.f32.vlgmr.msra.gmra.mrb[6].mxu1 %vm190_vm3, %v281_v56 }
 0x2ee   :  { %v426_v57 = vpop.f32.mrb[6].mxu1 }
 0x2ef   :  { %v430_v58 = vmul.f32 1.442695, %v426_v57  ;;  %v561_v59 = vpop.f32.mrb[7].mxu1 }
 0x2f1   :  { %607 = vpow2.f32 %v430_v58 }
 0x2fb   :  { %v608_v60 = vpop.eup %607 }
 0x2fc   :  { %v432_v61 = vrot.slane %v608_v60, 4 }
 0x2fe   :  { %v433_v62 = vadd.f32 %v608_v60, %v432_v61 }
 0x300   :  { %v434_v63 = vrot.slane %v433_v62, 2 }
 0x302   :  { %v435_v0 = vadd.f32 %v434_v63, %v433_v62 }
 0x304   :  { %v436_v1 = vrot.slane %v435_v0, 1 }
 0x306   :  { %v437_v2 = vadd.f32 %v436_v1, %v435_v0 }
 0x308   :  { %609 = vrcp.f32 %v437_v2 }
 0x312   :  { %v610_v3 = vpop.eup %609 }
 0x313   :  { %v439_v4 = vmul.f32 %v610_v3, %v437_v2 }
 0x315   :  { %v440_v5 = vsub.f32 2.0, %v439_v4 }
 0x317   :  { %v441_v6 = vmul.f32 %v610_v3, %v440_v5 }
 0x319   :  { %v442_v7 = vmul.f32 %v608_v60, %v441_v6 }
 0x31b   :  { %443 = vst [vmem:[#allocation2] sm:$0xff] %v442_v7 }
 0x31c   :  { %622 = shalt.err (!%p619_p4)
}
 0x31d   :  { %s623_s22 = scalar_lea.hbm %s811_s6, 128 }
 0x31e   :  { %p624_p5 = scmp.ne.s32.totalorder %s811_s6, %s623_s22  ;;  %p627_p6 = scmp.lt.u32.totalorder %s623_s22, %s811_s6 }
 0x320   :  { %p629_p7 = pnand %p627_p6, %p624_p5 }
 0x322   :  { %632 = shalt.err (!%p629_p7)
}
 0x323   :  { %453 = dma.vmem_to_hbm [thread:$0]  %s451_s19, 128, %s811_s6, [#allocation3]  }
 0x324   :  { %633 = dma.done.wait [#allocation3], 128  }
 0x325   :  { %634 = vsyncadd [#allocation3], 4294967168 }
 0x326   :  { %457 = vsyncpa [#allocation3], 1 }

</bundles_post_ra>
